<compile_context>
chip_gen: v7x
topology: tpu7x:2x2x1
jax: 0.10.0
libtpu: 0.0.40
codegen_flags: <defaults>
</compile_context>

<pallas_src>
import jax
import jax.numpy as jnp
from jax.experimental import pallas as pl
from jax.experimental.pallas import tpu as pltpu

N_FEATURES = 20
HIDDEN = 100
PAD = 128          # lane-aligned padded feature / hidden width
MAX_TILE_B = 512   # max batch tile (batch lives on the lane axis)


def mlp_kernel(x_ref,
               w1_ref, b1_ref, w2_ref, b2_ref, w3_ref, b3_ref,
               w4_ref, b4_ref, w5_ref, b5_ref, w6_ref, b6_ref,
               o_ref):
    """Fused transposed forward pass for one batch tile.

    x_ref: bf16 (PAD, TILE_B); w1..w5: bf16 (PAD, PAD); w6: bf16 (1, PAD);
    b1..b5: f32 (PAD, 1); b6: f32 (1, 1); o_ref: f32 (1, TILE_B).
    """
    h = x_ref[...]                                    # bf16 (PAD, TILE_B)

    def hidden_layer(w_ref, b_ref, h_bf16):
        acc = jnp.dot(w_ref[...], h_bf16,
                      preferred_element_type=jnp.float32)   # MXU, f32 acc
        acc = jnp.maximum(acc + b_ref[...], 0.0)             # bias+ReLU in f32
        return acc.astype(jnp.bfloat16)

    h = hidden_layer(w1_ref, b1_ref, h)
    h = hidden_layer(w2_ref, b2_ref, h)
    h = hidden_layer(w3_ref, b3_ref, h)
    h = hidden_layer(w4_ref, b4_ref, h)
    h = hidden_layer(w5_ref, b5_ref, h)

    # Final layer: (1, PAD) @ (PAD, TILE_B) -> dense (1, TILE_B) output row.
    out = jnp.dot(w6_ref[...], h, preferred_element_type=jnp.float32) + b6_ref[...]
    o_ref[...] = out.astype(o_ref.dtype)


def _pad_params(params):
    """Pad PyTorch-layout params (W:(out,in), b:(out,)) to lane-aligned shapes.

    Weights -> bf16 (PAD or 1, PAD); biases stay f32, shaped (out_p, 1) for a
    lane broadcast.  All padding is exact zero, so padded rows stay zero
    through every ReLU and the math matches the un-padded network.
    """
    flat = []
    for (w, b) in params:
        out_d, in_d = w.shape
        out_p = 1 if out_d == 1 else PAD
        wp = jnp.zeros((out_p, PAD), jnp.bfloat16).at[:out_d, :in_d].set(
            w.astype(jnp.bfloat16))
        bp = jnp.zeros((out_p, 1), jnp.float32).at[:out_d, 0].set(
            b.astype(jnp.float32))
        flat.append(wp)
        flat.append(bp)
    return flat


def mlp_forward(x, params, tile_b=None):
    """x: (B, N_FEATURES) f32, params: PyTorch-layout (W, b) per layer."""
    B, F = x.shape
    assert F <= PAD
    if tile_b is None:
        # Big enough to amortize per-grid-step overhead, never bigger than the
        # (128-rounded) batch itself; always a multiple of 128 (lane width).
        tile_b = min(MAX_TILE_B, max(128, pl.cdiv(B, 128) * 128))
    assert tile_b % 128 == 0
    num_tiles = pl.cdiv(B, tile_b)
    b_pad = num_tiles * tile_b

    # Transposed, zero-padded, bf16 input: (PAD, b_pad), batch on lanes.
    xT = jnp.zeros((PAD, b_pad), jnp.bfloat16).at[:F, :B].set(
        x.T.astype(jnp.bfloat16))

    flat = _pad_params(params)

    resident = lambda i: (0, 0)           # weights/biases: one resident block
    w_specs = [pl.BlockSpec(arr.shape, resident) for arr in flat]

    out = pl.pallas_call(
        mlp_kernel,
        out_shape=jax.ShapeDtypeStruct((1, b_pad), jnp.float32),
        grid=(num_tiles,),
        in_specs=[pl.BlockSpec((PAD, tile_b), lambda i: (0, i))] + w_specs,
        out_specs=pl.BlockSpec((1, tile_b), lambda i: (0, i)),
        compiler_params=pltpu.CompilerParams(
            dimension_semantics=("parallel",),      # shard tiles on v7x 2xTC
            vmem_limit_bytes=32 * 1024 * 1024),
    )(xT, *flat)

    return out[0, :B].reshape(B, 1)


def init_params(key, n_features):
    """PyTorch nn.Linear-style init, PyTorch layout: W (out,in), b (out,)."""
    dims = [(HIDDEN, n_features)] + [(HIDDEN, HIDDEN)] * 4 + [(1, HIDDEN)]
    params = []
    for (fan_out, fan_in) in dims:
        key, kw, kb = jax.random.split(key, 3)
        bound = float(fan_in) ** -0.5
        w = jax.random.uniform(kw, (fan_out, fan_in), jnp.float32, -bound, bound)
        b = jax.random.uniform(kb, (fan_out,), jnp.float32, -bound, bound)
        params.append((w, b))
    return params


def mlp_reference_bf16(x, params):
    """Reference with the same precision policy as the kernel
    (bf16 matmul inputs, f32 accumulation, f32 bias/ReLU)."""
    h = x.astype(jnp.bfloat16)
    for i, (w, b) in enumerate(params):
        acc = jnp.dot(h, w.T.astype(jnp.bfloat16),
                      preferred_element_type=jnp.float32) + b
        if i < len(params) - 1:
            h = jnp.maximum(acc, 0.0).astype(jnp.bfloat16)
        else:
            h = acc
    return h


if __name__ == "__main__":
    key = jax.random.PRNGKey(0)
    key, kx = jax.random.split(key)
    B = 8
    x = jax.random.normal(kx, (B, N_FEATURES), jnp.float32)
    params = init_params(key, N_FEATURES)

    out = jax.block_until_ready(mlp_forward(x, params))
    ref = mlp_reference_bf16(x, params).reshape(B, 1)
    assert out.shape == (B, 1), out.shape
    assert jnp.allclose(out, ref, atol=1e-2, rtol=1e-2), (out, ref)

    # Also exercise a multi-step batch grid (3 tiles of 128).
    key, kx2 = jax.random.split(key)
    B2 = 300
    x2 = jax.random.normal(kx2, (B2, N_FEATURES), jnp.float32)
    out2 = jax.block_until_ready(mlp_forward(x2, params, tile_b=128))
    ref2 = mlp_reference_bf16(x2, params).reshape(B2, 1)
    assert out2.shape == (B2, 1), out2.shape
    assert jnp.allclose(out2, ref2, atol=1e-2, rtol=1e-2)

    print("KERNEL_OK")
</pallas_src>

<mosaic_0001>
module attributes {stable_mosaic.version = 11 : i64} {
  func.func @mlp_kernel(%arg0: i32, %arg1: memref<128x128xbf16, #tpu.memory_space<vmem>>, %arg2: memref<128x128xbf16, #tpu.memory_space<vmem>>, %arg3: memref<128x1xf32, #tpu.memory_space<vmem>>, %arg4: memref<128x128xbf16, #tpu.memory_space<vmem>>, %arg5: memref<128x1xf32, #tpu.memory_space<vmem>>, %arg6: memref<128x128xbf16, #tpu.memory_space<vmem>>, %arg7: memref<128x1xf32, #tpu.memory_space<vmem>>, %arg8: memref<128x128xbf16, #tpu.memory_space<vmem>>, %arg9: memref<128x1xf32, #tpu.memory_space<vmem>>, %arg10: memref<128x128xbf16, #tpu.memory_space<vmem>>, %arg11: memref<128x1xf32, #tpu.memory_space<vmem>>, %arg12: memref<1x128xbf16, #tpu.memory_space<vmem>>, %arg13: memref<1x1xf32, #tpu.memory_space<vmem>>, %arg14: memref<1x128xf32, #tpu.memory_space<vmem>>) attributes {dimension_semantics = [#tpu.dimension_semantics<parallel>], iteration_bounds = array<i64: 1>, scalar_prefetch = 0 : i64, scratch_operands = 0 : i64, tpu.core_type = #tpu.core_type<tc>, window_params = [{transform_indices = @transform_0, window_bounds = array<i64: 128, 128>}, {pipeline_mode = #tpu.pipeline_mode<synchronous>, transform_indices = @transform_1, window_bounds = array<i64: 128, 128>}, {pipeline_mode = #tpu.pipeline_mode<synchronous>, transform_indices = @transform_2, window_bounds = array<i64: 128, 1>}, {pipeline_mode = #tpu.pipeline_mode<synchronous>, transform_indices = @transform_3, window_bounds = array<i64: 128, 128>}, {pipeline_mode = #tpu.pipeline_mode<synchronous>, transform_indices = @transform_4, window_bounds = array<i64: 128, 1>}, {pipeline_mode = #tpu.pipeline_mode<synchronous>, transform_indices = @transform_5, window_bounds = array<i64: 128, 128>}, {pipeline_mode = #tpu.pipeline_mode<synchronous>, transform_indices = @transform_6, window_bounds = array<i64: 128, 1>}, {pipeline_mode = #tpu.pipeline_mode<synchronous>, transform_indices = @transform_7, window_bounds = array<i64: 128, 128>}, {pipeline_mode = #tpu.pipeline_mode<synchronous>, transform_indices = @transform_8, window_bounds = array<i64: 128, 1>}, {pipeline_mode = #tpu.pipeline_mode<synchronous>, transform_indices = @transform_9, window_bounds = array<i64: 128, 128>}, {pipeline_mode = #tpu.pipeline_mode<synchronous>, transform_indices = @transform_10, window_bounds = array<i64: 128, 1>}, {pipeline_mode = #tpu.pipeline_mode<synchronous>, transform_indices = @transform_11, window_bounds = array<i64: 1, 128>}, {pipeline_mode = #tpu.pipeline_mode<synchronous>, transform_indices = @transform_12, window_bounds = array<i64: 1, 1>}, {transform_indices = @transform_13, window_bounds = array<i64: 1, 128>}]} {
    %c0 = arith.constant 0 : index
    %c0_0 = arith.constant 0 : index
    %0 = vector.load %arg1[%c0, %c0_0] : memref<128x128xbf16, #tpu.memory_space<vmem>>, vector<128x128xbf16>
    %c0_1 = arith.constant 0 : index
    %c0_2 = arith.constant 0 : index
    %1 = vector.load %arg2[%c0_1, %c0_2] : memref<128x128xbf16, #tpu.memory_space<vmem>>, vector<128x128xbf16>
    %cst = arith.constant dense<0.000000e+00> : vector<128x128xf32>
    %2 = tpu.matmul %1, %0, %cst {dimension_numbers = #tpu.dot_dimension_numbers<[1], [0], [0], [1], [0, 0, 1, 1], [], []>} : vector<128x128xbf16>, vector<128x128xbf16>, vector<128x128xf32> -> vector<128x128xf32>
    %c0_3 = arith.constant 0 : index
    %c0_4 = arith.constant 0 : index
    %3 = vector.load %arg3[%c0_3, %c0_4] : memref<128x1xf32, #tpu.memory_space<vmem>>, vector<128x1xf32>
    %4 = vector.broadcast %3 : vector<128x1xf32> to vector<128x128xf32>
    %5 = arith.addf %2, %4 : vector<128x128xf32>
    %cst_5 = arith.constant 0.000000e+00 : f32
    %6 = vector.broadcast %cst_5 : f32 to vector<128x128xf32>
    %7 = arith.maximumf %5, %6 : vector<128x128xf32>
    %8 = arith.truncf %7 : vector<128x128xf32> to vector<128x128xbf16>
    %c0_6 = arith.constant 0 : index
    %c0_7 = arith.constant 0 : index
    %9 = vector.load %arg4[%c0_6, %c0_7] : memref<128x128xbf16, #tpu.memory_space<vmem>>, vector<128x128xbf16>
    %cst_8 = arith.constant dense<0.000000e+00> : vector<128x128xf32>
    %10 = tpu.matmul %9, %8, %cst_8 {dimension_numbers = #tpu.dot_dimension_numbers<[1], [0], [0], [1], [0, 0, 1, 1], [], []>} : vector<128x128xbf16>, vector<128x128xbf16>, vector<128x128xf32> -> vector<128x128xf32>
    %c0_9 = arith.constant 0 : index
    %c0_10 = arith.constant 0 : index
    %11 = vector.load %arg5[%c0_9, %c0_10] : memref<128x1xf32, #tpu.memory_space<vmem>>, vector<128x1xf32>
    %12 = vector.broadcast %11 : vector<128x1xf32> to vector<128x128xf32>
    %13 = arith.addf %10, %12 : vector<128x128xf32>
    %cst_11 = arith.constant 0.000000e+00 : f32
    %14 = vector.broadcast %cst_11 : f32 to vector<128x128xf32>
    %15 = arith.maximumf %13, %14 : vector<128x128xf32>
    %16 = arith.truncf %15 : vector<128x128xf32> to vector<128x128xbf16>
    %c0_12 = arith.constant 0 : index
    %c0_13 = arith.constant 0 : index
    %17 = vector.load %arg6[%c0_12, %c0_13] : memref<128x128xbf16, #tpu.memory_space<vmem>>, vector<128x128xbf16>
    %cst_14 = arith.constant dense<0.000000e+00> : vector<128x128xf32>
    %18 = tpu.matmul %17, %16, %cst_14 {dimension_numbers = #tpu.dot_dimension_numbers<[1], [0], [0], [1], [0, 0, 1, 1], [], []>} : vector<128x128xbf16>, vector<128x128xbf16>, vector<128x128xf32> -> vector<128x128xf32>
    %c0_15 = arith.constant 0 : index
    %c0_16 = arith.constant 0 : index
    %19 = vector.load %arg7[%c0_15, %c0_16] : memref<128x1xf32, #tpu.memory_space<vmem>>, vector<128x1xf32>
    %20 = vector.broadcast %19 : vector<128x1xf32> to vector<128x128xf32>
    %21 = arith.addf %18, %20 : vector<128x128xf32>
    %cst_17 = arith.constant 0.000000e+00 : f32
    %22 = vector.broadcast %cst_17 : f32 to vector<128x128xf32>
    %23 = arith.maximumf %21, %22 : vector<128x128xf32>
    %24 = arith.truncf %23 : vector<128x128xf32> to vector<128x128xbf16>
    %c0_18 = arith.constant 0 : index
    %c0_19 = arith.constant 0 : index
    %25 = vector.load %arg8[%c0_18, %c0_19] : memref<128x128xbf16, #tpu.memory_space<vmem>>, vector<128x128xbf16>
    %cst_20 = arith.constant dense<0.000000e+00> : vector<128x128xf32>
    %26 = tpu.matmul %25, %24, %cst_20 {dimension_numbers = #tpu.dot_dimension_numbers<[1], [0], [0], [1], [0, 0, 1, 1], [], []>} : vector<128x128xbf16>, vector<128x128xbf16>, vector<128x128xf32> -> vector<128x128xf32>
    %c0_21 = arith.constant 0 : index
    %c0_22 = arith.constant 0 : index
    %27 = vector.load %arg9[%c0_21, %c0_22] : memref<128x1xf32, #tpu.memory_space<vmem>>, vector<128x1xf32>
    %28 = vector.broadcast %27 : vector<128x1xf32> to vector<128x128xf32>
    %29 = arith.addf %26, %28 : vector<128x128xf32>
    %cst_23 = arith.constant 0.000000e+00 : f32
    %30 = vector.broadcast %cst_23 : f32 to vector<128x128xf32>
    %31 = arith.maximumf %29, %30 : vector<128x128xf32>
    %32 = arith.truncf %31 : vector<128x128xf32> to vector<128x128xbf16>
    %c0_24 = arith.constant 0 : index
    %c0_25 = arith.constant 0 : index
    %33 = vector.load %arg10[%c0_24, %c0_25] : memref<128x128xbf16, #tpu.memory_space<vmem>>, vector<128x128xbf16>
    %cst_26 = arith.constant dense<0.000000e+00> : vector<128x128xf32>
    %34 = tpu.matmul %33, %32, %cst_26 {dimension_numbers = #tpu.dot_dimension_numbers<[1], [0], [0], [1], [0, 0, 1, 1], [], []>} : vector<128x128xbf16>, vector<128x128xbf16>, vector<128x128xf32> -> vector<128x128xf32>
    %c0_27 = arith.constant 0 : index
    %c0_28 = arith.constant 0 : index
    %35 = vector.load %arg11[%c0_27, %c0_28] : memref<128x1xf32, #tpu.memory_space<vmem>>, vector<128x1xf32>
    %36 = vector.broadcast %35 : vector<128x1xf32> to vector<128x128xf32>
    %37 = arith.addf %34, %36 : vector<128x128xf32>
    %cst_29 = arith.constant 0.000000e+00 : f32
    %38 = vector.broadcast %cst_29 : f32 to vector<128x128xf32>
    %39 = arith.maximumf %37, %38 : vector<128x128xf32>
    %40 = arith.truncf %39 : vector<128x128xf32> to vector<128x128xbf16>
    %c0_30 = arith.constant 0 : index
    %c0_31 = arith.constant 0 : index
    %41 = vector.load %arg12[%c0_30, %c0_31] : memref<1x128xbf16, #tpu.memory_space<vmem>>, vector<1x128xbf16>
    %cst_32 = arith.constant dense<0.000000e+00> : vector<1x128xf32>
    %42 = tpu.matmul %41, %40, %cst_32 {dimension_numbers = #tpu.dot_dimension_numbers<[1], [0], [0], [1], [0, 0, 1, 1], [], []>} : vector<1x128xbf16>, vector<128x128xbf16>, vector<1x128xf32> -> vector<1x128xf32>
    %c0_33 = arith.constant 0 : index
    %c0_34 = arith.constant 0 : index
    %43 = vector.load %arg13[%c0_33, %c0_34] : memref<1x1xf32, #tpu.memory_space<vmem>>, vector<1x1xf32>
    %44 = vector.broadcast %43 : vector<1x1xf32> to vector<1x128xf32>
    %45 = arith.addf %42, %44 : vector<1x128xf32>
    %c0_35 = arith.constant 0 : index
    %c0_36 = arith.constant 0 : index
    %46 = vector.load %arg14[%c0_35, %c0_36] : memref<1x128xf32, #tpu.memory_space<vmem>>, vector<1x128xf32>
    tpu.vector_store %arg14[%c0_35, %c0_36], %45 {strides = array<i32>} : memref<1x128xf32, #tpu.memory_space<vmem>>, vector<1x128xf32>,
    return
  }
  func.func @transform_0(%arg0: i32) -> (i32, i32) {
    %c0_i32 = arith.constant 0 : i32
    %c0_i32_0 = arith.constant 0 : i32
    return %c0_i32, %arg0 : i32, i32
  }
  func.func @transform_1(%arg0: i32) -> (i32, i32) {
    %c0_i32 = arith.constant 0 : i32
    %c0_i32_0 = arith.constant 0 : i32
    %c0_i32_1 = arith.constant 0 : i32
    return %c0_i32, %c0_i32_0 : i32, i32
  }
  func.func @transform_2(%arg0: i32) -> (i32, i32) {
    %c0_i32 = arith.constant 0 : i32
    %c0_i32_0 = arith.constant 0 : i32
    %c0_i32_1 = arith.constant 0 : i32
    return %c0_i32, %c0_i32_0 : i32, i32
  }
  func.func @transform_3(%arg0: i32) -> (i32, i32) {
    %c0_i32 = arith.constant 0 : i32
    %c0_i32_0 = arith.constant 0 : i32
    %c0_i32_1 = arith.constant 0 : i32
    return %c0_i32, %c0_i32_0 : i32, i32
  }
  func.func @transform_4(%arg0: i32) -> (i32, i32) {
    %c0_i32 = arith.constant 0 : i32
    %c0_i32_0 = arith.constant 0 : i32
    %c0_i32_1 = arith.constant 0 : i32
    return %c0_i32, %c0_i32_0 : i32, i32
  }
  func.func @transform_5(%arg0: i32) -> (i32, i32) {
    %c0_i32 = arith.constant 0 : i32
    %c0_i32_0 = arith.constant 0 : i32
    %c0_i32_1 = arith.constant 0 : i32
    return %c0_i32, %c0_i32_0 : i32, i32
  }
  func.func @transform_6(%arg0: i32) -> (i32, i32) {
    %c0_i32 = arith.constant 0 : i32
    %c0_i32_0 = arith.constant 0 : i32
    %c0_i32_1 = arith.constant 0 : i32
    return %c0_i32, %c0_i32_0 : i32, i32
  }
  func.func @transform_7(%arg0: i32) -> (i32, i32) {
    %c0_i32 = arith.constant 0 : i32
    %c0_i32_0 = arith.constant 0 : i32
    %c0_i32_1 = arith.constant 0 : i32
    return %c0_i32, %c0_i32_0 : i32, i32
  }
  func.func @transform_8(%arg0: i32) -> (i32, i32) {
    %c0_i32 = arith.constant 0 : i32
    %c0_i32_0 = arith.constant 0 : i32
    %c0_i32_1 = arith.constant 0 : i32
    return %c0_i32, %c0_i32_0 : i32, i32
  }
  func.func @transform_9(%arg0: i32) -> (i32, i32) {
    %c0_i32 = arith.constant 0 : i32
    %c0_i32_0 = arith.constant 0 : i32
    %c0_i32_1 = arith.constant 0 : i32
    return %c0_i32, %c0_i32_0 : i32, i32
  }
  func.func @transform_10(%arg0: i32) -> (i32, i32) {
    %c0_i32 = arith.constant 0 : i32
    %c0_i32_0 = arith.constant 0 : i32
    %c0_i32_1 = arith.constant 0 : i32
    return %c0_i32, %c0_i32_0 : i32, i32
  }
  func.func @transform_11(%arg0: i32) -> (i32, i32) {
    %c0_i32 = arith.constant 0 : i32
    %c0_i32_0 = arith.constant 0 : i32
    %c0_i32_1 = arith.constant 0 : i32
    return %c0_i32, %c0_i32_0 : i32, i32
  }
  func.func @transform_12(%arg0: i32) -> (i32, i32) {
    %c0_i32 = arith.constant 0 : i32
    %c0_i32_0 = arith.constant 0 : i32
    %c0_i32_1 = arith.constant 0 : i32
    return %c0_i32, %c0_i32_0 : i32, i32
  }
  func.func @transform_13(%arg0: i32) -> (i32, i32) {
    %c0_i32 = arith.constant 0 : i32
    %c0_i32_0 = arith.constant 0 : i32
    return %c0_i32, %arg0 : i32, i32
  }
}

</mosaic_0001>

<bundles_post_ra>
// kernel: tpu_custom_call.1
= control target key start
LH: loop header
LB: loop body
LE: loop exit
PB: predicated region body
PF: predicated region fallthrough
CT: control target
= control target key end

     0   :  { %s2463_s0 = inlined_call_operand.vmem [shape: bf16[128,128], index: 0, kind: input, shape index: {}]   ;;  %s2464_s1 = inlined_call_operand.vmem [shape: bf16[128,128], index: 1, kind: input, shape index: {}]   ;;  %s2465_s2 = inlined_call_operand.vmem [shape: f32[128,1], index: 2, kind: input, shape index: {}]   ;;  %s2466_s3 = inlined_call_operand.vmem [shape: bf16[128,128], index: 3, kind: input, shape index: {}]   ;;  %s2467_s4 = inlined_call_operand.vmem [shape: f32[128,1], index: 4, kind: input, shape index: {}]   ;;  %s2468_s5 = inlined_call_operand.vmem [shape: bf16[128,128], index: 5, kind: input, shape index: {}]   ;;  %s2469_s6 = inlined_call_operand.vmem [shape: f32[128,1], index: 6, kind: input, shape index: {}]   ;;  %s2470_s7 = inlined_call_operand.vmem [shape: bf16[128,128], index: 7, kind: input, shape index: {}]   ;;  %s2471_s8 = inlined_call_operand.vmem [shape: f32[128,1], index: 8, kind: input, shape index: {}]   ;;  %s2472_s9 = inlined_call_operand.vmem [shape: bf16[128,128], index: 9, kind: input, shape index: {}]   ;;  %s2473_s10 = inlined_call_operand.vmem [shape: f32[128,1], index: 10, kind: input, shape index: {}]   ;;  %s2474_s11 = inlined_call_operand.vmem [shape: bf16[1,128], index: 11, kind: input, shape index: {}]   ;;  %s2475_s12 = inlined_call_operand.<no memory space> [shape: f32[1,1], index: 12, kind: input, shape index: {}]   ;;  %s2476_s13 = inlined_call_operand.hbm [shape: f32[1,128], index: 13, kind: output, shape index: {}]  }
   0x1   :  { %v18_v0 = vstv %s2475_s12 }
   0x2   :  { %19 = vst [vmem:[#allocation2] sm:$0x1] %v18_v0 }
   0x3   :  { %v82_v1 = vld [vmem:[%s2465_s2 + $0x10] sm:$0xff]  ;;  %v80_v2 = vld [vmem:[%s2465_s2] sm:$0xff]  ;;  %v1978_v3 = vmov 0   ;;  %v83_v5 = vld [vmem:[%s2465_s2 + $0x18] sm:$0xff] }
   0x4   :  { %1905 = vset.pattern.permute.xlu1 %v1978_v3  ;;  %1904 = vset.pattern.permute.xlu0 %v1978_v3  ;;  %v1906_v4 = vld [vmem:[%s2463_s0] sm:$0xff]   ;;  %v81_v6 = vld [vmem:[%s2465_s2 + $0x8] sm:$0xff]  ;;  %v1908_v8 = vld [vmem:[%s2463_s0 + $0x10] sm:$0xff]  }
   0x5   :  { %108 = vperm.xlu1 %1905, %v82_v1   ;;  %98 = vperm.xlu0 %1904, %v80_v2   ;;  %v1907_v7 = vld [vmem:[%s2463_s0 + $0x8] sm:$0xff]   ;;  %v84_v10 = vld [vmem:[%s2465_s2 + $0x20] sm:$0xff]  ;;  %v1909_v11 = vld [vmem:[%s2463_s0 + $0x18] sm:$0xff]  }
   0x6   :  { %1720 = vmatprep.subr.bf16.mxu0 %v1906_v4  ;;  %v85_v9 = vld [vmem:[%s2465_s2 + $0x28] sm:$0xff]  ;;  %v87_v12 = vld [vmem:[%s2465_s2 + $0x38] sm:$0xff]  ;;  %v86_v13 = vld [vmem:[%s2465_s2 + $0x30] sm:$0xff] }
   0x7   :  { %1721 = vmatpush3.bf16.msra.mxu0 %v1906_v4  ;;  %v89_v14 = vld [vmem:[%s2465_s2 + $0x48] sm:$0xff]  ;;  %v1910_v15 = vld [vmem:[%s2463_s0 + $0x20] sm:$0xff]   ;;  %v91_v19 = vld [vmem:[%s2465_s2 + $0x58] sm:$0xff] }
   0x8   :  { %1722 = vmatprep.subr.bf16.mxu0 %v1907_v7  ;;  %v1914_v16 = vld [vmem:[%s2464_s1] sm:$0xff]   ;;  %v1911_v18 = vld [vmem:[%s2463_s0 + $0x28] sm:$0xff]   ;;  %v90_v20 = vld [vmem:[%s2465_s2 + $0x50] sm:$0xff] }
   0x9   :  { %113 = vperm.xlu1 %1905, %v83_v5   ;;  %103 = vperm.xlu0 %1904, %v81_v6   ;;  %v88_v17 = vld [vmem:[%s2465_s2 + $0x40] sm:$0xff]  ;;  %v1912_v21 = vld [vmem:[%s2463_s0 + $0x30] sm:$0xff]   ;;  %v93_v22 = vld [vmem:[%s2465_s2 + $0x68] sm:$0xff] }
   0xa   :  { %1736 = vmatprep.mubr.bf16.mxu0 %v1914_v16  ;;  %v92_v23 = vld [vmem:[%s2465_s2 + $0x60] sm:$0xff]  ;;  %v1913_v24 = vld [vmem:[%s2463_s0 + $0x38] sm:$0xff]   ;;  %v94_v26 = vld [vmem:[%s2465_s2 + $0x70] sm:$0xff] }
   0xb   :  { %1723 = vmatpush3.bf16.msra.mxu0 %v1907_v7  ;;  %v95_v25 = vld [vmem:[%s2465_s2 + $0x78] sm:$0xff]  ;;  %v410_v27 = vld [vmem:[%s2467_s4 + $0x8] sm:$0xff]  ;;  %v409_v28 = vld [vmem:[%s2467_s4] sm:$0xff] }
   0xc   :  { %1724 = vmatprep.subr.bf16.mxu0 %v1908_v8  ;;  %v1915_v29 = vld [vmem:[%s2464_s1 + $0x8] sm:$0xff]   ;;  %v1916_v30 = vld [vmem:[%s2464_s1 + $0x10] sm:$0xff]   ;;  %v412_v31 = vld [vmem:[%s2467_s4 + $0x18] sm:$0xff] }
   0xd   :  { %123 = vperm.xlu1 %1905, %v85_v9   ;;  %118 = vperm.xlu0 %1904, %v84_v10   ;;  %v411_v32 = vld [vmem:[%s2467_s4 + $0x10] sm:$0xff]  ;;  %v414_v33 = vld [vmem:[%s2467_s4 + $0x28] sm:$0xff]  ;;  %v413_v34 = vld [vmem:[%s2467_s4 + $0x20] sm:$0xff] }
   0xe   :  { %v1917_v35 = vld [vmem:[%s2464_s1 + $0x18] sm:$0xff]   ;;  %v1918_v36 = vld [vmem:[%s2464_s1 + $0x20] sm:$0xff]   ;;  %v415_v38 = vld [vmem:[%s2467_s4 + $0x30] sm:$0xff] }
   0xf   :  { %1725 = vmatpush3.bf16.msra.mxu0 %v1908_v8  ;;  %v416_v37 = vld [vmem:[%s2467_s4 + $0x38] sm:$0xff]  ;;  %v418_v39 = vld [vmem:[%s2467_s4 + $0x48] sm:$0xff]  ;;  %v417_v40 = vld [vmem:[%s2467_s4 + $0x40] sm:$0xff] }
  0x10   :  { %1726 = vmatprep.subr.bf16.mxu0 %v1909_v11  ;;  %v1919_v41 = vld [vmem:[%s2464_s1 + $0x28] sm:$0xff]   ;;  %v1920_v42 = vld [vmem:[%s2464_s1 + $0x30] sm:$0xff]   ;;  %v420_v43 = vld [vmem:[%s2467_s4 + $0x58] sm:$0xff] }
  0x11   :  { %133 = vperm.xlu1 %1905, %v87_v12   ;;  %128 = vperm.xlu0 %1904, %v86_v13   ;;  %v419_v44 = vld [vmem:[%s2467_s4 + $0x50] sm:$0xff]  ;;  %v422_v45 = vld [vmem:[%s2467_s4 + $0x68] sm:$0xff]  ;;  %v421_v46 = vld [vmem:[%s2467_s4 + $0x60] sm:$0xff] }
  0x12   :  { %v1921_v47 = vld [vmem:[%s2464_s1 + $0x38] sm:$0xff]   ;;  %v423_v49 = vld [vmem:[%s2467_s4 + $0x70] sm:$0xff]  ;;  %v691_v50 = vld [vmem:[%s2469_s6 + $0x8] sm:$0xff] }
  0x13   :  { %1727 = vmatpush3.bf16.msra.mxu0 %v1909_v11  ;;  %v424_v48 = vld [vmem:[%s2467_s4 + $0x78] sm:$0xff]  ;;  %v690_v51 = vld [vmem:[%s2469_s6] sm:$0xff] }
  0x14   :  { %1728 = vmatprep.subr.bf16.mxu0 %v1910_v15 }
  0x15   :  { %143 = vperm.xlu1 %1905, %v89_v14   ;;  %138 = vperm.xlu0 %1904, %v88_v17  }
  0x17   :  { %1729 = vmatpush3.bf16.msra.mxu0 %v1910_v15 }
  0x18   :  { %1730 = vmatprep.subr.bf16.mxu0 %v1911_v18 }
  0x19   :  { %153 = vperm.xlu1 %1905, %v91_v19   ;;  %148 = vperm.xlu0 %1904, %v90_v20  }
  0x1b   :  { %1731 = vmatpush3.bf16.msra.mxu0 %v1911_v18 }
  0x1c   :  { %1732 = vmatprep.subr.bf16.mxu0 %v1912_v21 }
  0x1d   :  { %163 = vperm.xlu1 %1905, %v93_v22   ;;  %158 = vperm.xlu0 %1904, %v92_v23  }
  0x1f   :  { %1733 = vmatpush3.bf16.msra.mxu0 %v1912_v21 }
  0x20   :  { %1734 = vmatprep.subr.bf16.mxu0 %v1913_v24 }
  0x21   :  { %173 = vperm.xlu1 %1905, %v95_v25   ;;  %168 = vperm.xlu0 %1904, %v94_v26  }
  0x23   :  { %1735 = vmatpush3.bf16.msra.mxu0 %v1913_v24 }
  0x25   :  { %432 = vperm.xlu1 %1905, %v410_v27   ;;  %427 = vperm.xlu0 %1904, %v409_v28  }
  0x26   :  { %1737 = vmatmul.mubr.bf16.vlgmr.msra.gmra.mrb[0].mxu0 %v1915_v29 }
  0x27   :  { %1740 = vmatprep.mubr.bf16.mxu0 %v1916_v30 }
  0x29   :  { %442 = vperm.xlu1 %1905, %v412_v31   ;;  %437 = vperm.xlu0 %1904, %v411_v32  }
  0x2d   :  { %452 = vperm.xlu1 %1905, %v414_v33   ;;  %447 = vperm.xlu0 %1904, %v413_v34  }
  0x2e   :  { %1741 = vmatmul.mubr.bf16.gmra.mrb[4].mxu0 %v1917_v35 }
  0x2f   :  { %1744 = vmatprep.mubr.bf16.mxu0 %v1918_v36 }
  0x31   :  { %462 = vperm.xlu1 %1905, %v416_v37   ;;  %457 = vperm.xlu0 %1904, %v415_v38  }
  0x35   :  { %472 = vperm.xlu1 %1905, %v418_v39   ;;  %467 = vperm.xlu0 %1904, %v417_v40  }
  0x36   :  { %1745 = vmatmul.mubr.bf16.gmra.mrb[8].mxu0 %v1919_v41 }
  0x37   :  { %1748 = vmatprep.mubr.bf16.mxu0 %v1920_v42 }
  0x39   :  { %482 = vperm.xlu1 %1905, %v420_v43   ;;  %477 = vperm.xlu0 %1904, %v419_v44  }
  0x3d   :  { %492 = vperm.xlu1 %1905, %v422_v45   ;;  %487 = vperm.xlu0 %1904, %v421_v46  }
  0x3e   :  { %1749 = vmatmul.mubr.bf16.gmra.mrb[12].mxu0 %v1921_v47 }
  0x41   :  { %502 = vperm.xlu1 %1905, %v424_v48   ;;  %497 = vperm.xlu0 %1904, %v423_v49  }
  0x42   :  { %20 = vsyncpa [#allocation4], 0  ;;  %v693_v52 = vld [vmem:[%s2469_s6 + $0x18] sm:$0xff]  ;;  %v692_v53 = vld [vmem:[%s2469_s6 + $0x10] sm:$0xff]  ;;  %vm1980_vm0 = vmmov 0   ;;  %s1981_s19 = smov [#allocation3]  }
  0x43   :  { %v695_v54 = vld [vmem:[%s2469_s6 + $0x28] sm:$0xff]  ;;  %v694_v55 = vld [vmem:[%s2469_s6 + $0x20] sm:$0xff]  ;;  %v697_v56 = vld [vmem:[%s2469_s6 + $0x38] sm:$0xff]  ;;  %s1575_s20 = sshll.u32 %s1981_s19, 4  ;;  %s1576_s20 = int_to_ptr.vmem [resolvable:$true] %s1575_s20 }
  0x44   :  { %v696_v57 = vld [vmem:[%s2469_s6 + $0x30] sm:$0xff]  ;;  %v699_v58 = vld [vmem:[%s2469_s6 + $0x48] sm:$0xff]  ;;  %v698_v59 = vld [vmem:[%s2469_s6 + $0x40] sm:$0xff]  ;;  %s1954_s21 = scalar_lea.vmem %s1576_s20, 16  ;;  %s1958_s22 = scalar_lea.vmem %s1576_s20, 32 }
  0x45   :  { %713 = vperm.xlu1 %1905, %v691_v50   ;;  %708 = vperm.xlu0 %1904, %v690_v51   ;;  %v701_v60 = vld [vmem:[%s2469_s6 + $0x58] sm:$0xff]  ;;  %v700_v61 = vld [vmem:[%s2469_s6 + $0x50] sm:$0xff]  ;;  %v703_v62 = vld [vmem:[%s2469_s6 + $0x68] sm:$0xff]  ;;  %p1955_p0 = scmp.ne.s32.totalorder %s1576_s20, %s1954_s21  ;;  %p1959_p1 = scmp.lt.s32.totalorder %s1576_s20, %s1576_s20 }
  0x46   :  { %v702_v63 = vld [vmem:[%s2469_s6 + $0x60] sm:$0xff]  ;;  %v705_v0 = vld [vmem:[%s2469_s6 + $0x78] sm:$0xff]  ;;  %v704_v1 = vld [vmem:[%s2469_s6 + $0x70] sm:$0xff]  ;;  %p1960_p2 = scmp.lt.s32.totalorder %s1958_s22, %s1954_s21 }
  0x47   :  { %v972_v2 = vld [vmem:[%s2471_s8 + $0x8] sm:$0xff]  ;;  %v971_v3 = vld [vmem:[%s2471_s8] sm:$0xff]  ;;  %v974_v4 = vld [vmem:[%s2471_s8 + $0x18] sm:$0xff] }
  0x48   :  { %v973_v5 = vld [vmem:[%s2471_s8 + $0x10] sm:$0xff]  ;;  %v976_v6 = vld [vmem:[%s2471_s8 + $0x28] sm:$0xff]  ;;  %v975_v7 = vld [vmem:[%s2471_s8 + $0x20] sm:$0xff]  ;;  %p1961_p3 = por %p1960_p2, %p1959_p1 }
  0x49   :  { %723 = vperm.xlu1 %1905, %v693_v52   ;;  %718 = vperm.xlu0 %1904, %v692_v53   ;;  %v978_v8 = vld [vmem:[%s2471_s8 + $0x38] sm:$0xff]  ;;  %v977_v9 = vld [vmem:[%s2471_s8 + $0x30] sm:$0xff]  ;;  %v980_v10 = vld [vmem:[%s2471_s8 + $0x48] sm:$0xff] }
  0x4a   :  { %v979_v11 = vld [vmem:[%s2471_s8 + $0x40] sm:$0xff]  ;;  %v982_v12 = vld [vmem:[%s2471_s8 + $0x58] sm:$0xff]  ;;  %v981_v13 = vld [vmem:[%s2471_s8 + $0x50] sm:$0xff]  ;;  %p1962_p4 = pnand %p1961_p3, %p1955_p0 }
  0x4b   :  { %v984_v14 = vld [vmem:[%s2471_s8 + $0x68] sm:$0xff]  ;;  %v983_v15 = vld [vmem:[%s2471_s8 + $0x60] sm:$0xff]  ;;  %v986_v16 = vld [vmem:[%s2471_s8 + $0x78] sm:$0xff] }
  0x4c   :  { %v985_v17 = vld [vmem:[%s2471_s8 + $0x70] sm:$0xff]  ;;  %v1253_v18 = vld [vmem:[%s2473_s10 + $0x8] sm:$0xff]  ;;  %v1252_v19 = vld [vmem:[%s2473_s10] sm:$0xff] }
  0x4d   :  { %733 = vperm.xlu1 %1905, %v695_v54   ;;  %728 = vperm.xlu0 %1904, %v694_v55   ;;  %v1255_v20 = vld [vmem:[%s2473_s10 + $0x18] sm:$0xff]  ;;  %v1254_v21 = vld [vmem:[%s2473_s10 + $0x10] sm:$0xff]  ;;  %v1257_v22 = vld [vmem:[%s2473_s10 + $0x28] sm:$0xff] }
  0x4e   :  { %v1256_v23 = vld [vmem:[%s2473_s10 + $0x20] sm:$0xff]  ;;  %v1259_v24 = vld [vmem:[%s2473_s10 + $0x38] sm:$0xff]  ;;  %v1258_v25 = vld [vmem:[%s2473_s10 + $0x30] sm:$0xff] }
  0x4f   :  { %v1261_v26 = vld [vmem:[%s2473_s10 + $0x48] sm:$0xff]  ;;  %v1260_v27 = vld [vmem:[%s2473_s10 + $0x40] sm:$0xff]  ;;  %v1263_v28 = vld [vmem:[%s2473_s10 + $0x58] sm:$0xff] }
  0x50   :  { %v1262_v29 = vld [vmem:[%s2473_s10 + $0x50] sm:$0xff]  ;;  %v1265_v30 = vld [vmem:[%s2473_s10 + $0x68] sm:$0xff]  ;;  %v1264_v31 = vld [vmem:[%s2473_s10 + $0x60] sm:$0xff] }
  0x51   :  { %743 = vperm.xlu1 %1905, %v697_v56   ;;  %738 = vperm.xlu0 %1904, %v696_v57   ;;  %v1267_v32 = vld [vmem:[%s2473_s10 + $0x78] sm:$0xff]  ;;  %v1266_v33 = vld [vmem:[%s2473_s10 + $0x70] sm:$0xff]  ;;  %v1922_v34 = vld [vmem:[%s2466_s3] sm:$0xff]  }
  0x52   :  { %v1518_v35 = vld [vmem:[#allocation2] sm:$0x1]  ;;  %1768 = vmatprep.mubr.bf16.mxu1 %v1922_v34 }
  0x55   :  { %753 = vperm.xlu1 %1905, %v699_v58   ;;  %748 = vperm.xlu0 %1904, %v698_v59  }
  0x59   :  { %763 = vperm.xlu1 %1905, %v701_v60   ;;  %758 = vperm.xlu0 %1904, %v700_v61  }
  0x5d   :  { %773 = vperm.xlu1 %1905, %v703_v62   ;;  %768 = vperm.xlu0 %1904, %v702_v63  }
  0x61   :  { %783 = vperm.xlu1 %1905, %v705_v0   ;;  %778 = vperm.xlu0 %1904, %v704_v1  }
  0x65   :  { %994 = vperm.xlu1 %1905, %v972_v2   ;;  %989 = vperm.xlu0 %1904, %v971_v3  }
  0x69   :  { %1004 = vperm.xlu1 %1905, %v974_v4   ;;  %999 = vperm.xlu0 %1904, %v973_v5  }
  0x6d   :  { %1014 = vperm.xlu1 %1905, %v976_v6   ;;  %1009 = vperm.xlu0 %1904, %v975_v7  }
  0x71   :  { %1024 = vperm.xlu1 %1905, %v978_v8   ;;  %1019 = vperm.xlu0 %1904, %v977_v9  }
  0x75   :  { %1034 = vperm.xlu1 %1905, %v980_v10   ;;  %1029 = vperm.xlu0 %1904, %v979_v11  }
  0x79   :  { %1044 = vperm.xlu1 %1905, %v982_v12   ;;  %1039 = vperm.xlu0 %1904, %v981_v13  }
  0x7d   :  { %1054 = vperm.xlu1 %1905, %v984_v14   ;;  %1049 = vperm.xlu0 %1904, %v983_v15  }
  0x81   :  { %1064 = vperm.xlu1 %1905, %v986_v16   ;;  %1059 = vperm.xlu0 %1904, %v985_v17  }
  0x84   :  { %v99_v36 = vpop.permute.xlu0 %98  ;;  %v109_v37 = vpop.permute.xlu1 %108 }
  0x85   :  { %1275 = vperm.xlu1 %1905, %v1253_v18   ;;  %1270 = vperm.xlu0 %1904, %v1252_v19  }
  0x88   :  { %v104_v38 = vpop.permute.xlu0 %103  ;;  %v114_v39 = vpop.permute.xlu1 %113 }
  0x89   :  { %1285 = vperm.xlu1 %1905, %v1255_v20   ;;  %1280 = vperm.xlu0 %1904, %v1254_v21  }
  0x8c   :  { %v119_v40 = vpop.permute.xlu0 %118  ;;  %v124_v41 = vpop.permute.xlu1 %123 }
  0x8d   :  { %1295 = vperm.xlu1 %1905, %v1257_v22   ;;  %1290 = vperm.xlu0 %1904, %v1256_v23  }
  0x90   :  { %v129_v42 = vpop.permute.xlu0 %128  ;;  %v134_v46 = vpop.permute.xlu1 %133 }
  0x91   :  { %1305 = vperm.xlu1 %1905, %v1259_v24   ;;  %1300 = vperm.xlu0 %1904, %v1258_v25  }
  0x94   :  { %v139_v54 = vpop.permute.xlu0 %138  ;;  %v144_v58 = vpop.permute.xlu1 %143 }
  0x95   :  { %1315 = vperm.xlu1 %1905, %v1261_v26   ;;  %1310 = vperm.xlu0 %1904, %v1260_v27  }
  0x98   :  { %v149_v2 = vpop.permute.xlu0 %148  ;;  %v154_v7 = vpop.permute.xlu1 %153 }
  0x99   :  { %1325 = vperm.xlu1 %1905, %v1263_v28   ;;  %1320 = vperm.xlu0 %1904, %v1262_v29  }
  0x9c   :  { %v159_v15 = vpop.permute.xlu0 %158  ;;  %v164_v19 = vpop.permute.xlu1 %163 }
  0x9d   :  { %1335 = vperm.xlu1 %1905, %v1265_v30   ;;  %1330 = vperm.xlu0 %1904, %v1264_v31  }
  0xa0   :  { %v169_v27 = vpop.permute.xlu0 %168 }
  0xa1   :  { %1345 = vperm.xlu1 %1905, %v1267_v32   ;;  %1340 = vperm.xlu0 %1904, %v1266_v33   ;;  %v174_v32 = vpop.permute.xlu1 %173 }
  0xa5   :  { %1521 = vperm.xlu0 %1904, %v1518_v35  }
  0xf9   :  { %v1738_v43 = vpop.f32.mrb[0].mxu0 }
  0xfa   :  { %v315_v44 = vadd.f32 %v1738_v43, %v109_v37  ;;  %v306_v45 = vpop.f32.mrb[1].mxu0 }
  0xfb   :  { %v1739_v47 = vpop.f32.mrb[2].mxu0  ;;  %v307_v48 = vadd.f32 %v306_v45, %v99_v36  ;;  %v1924_v45 = vld [vmem:[%s2466_s3 + $0x10] sm:$0xff]  }
  0xfc   :  { %v318_v49 = vadd.f32 %v1739_v47, %v114_v39  ;;  %v309_v50 = vpop.f32.mrb[3].mxu0  ;;  %v371_v51 = vmax.f32 %v315_v44, 0.0  ;;  %v1923_v44 = vld [vmem:[%s2466_s3 + $0x8] sm:$0xff]   ;;  %v1926_v47 = vld [vmem:[%s2466_s3 + $0x20] sm:$0xff]  }
  0xfd   :  { %v310_v53 = vadd.f32 %v309_v50, %v104_v38  ;;  %v369_v55 = vmax.f32 %v307_v48, 0.0  ;;  %v1927_v48 = vld [vmem:[%s2466_s3 + $0x28] sm:$0xff]   ;;  %v1929_v50 = vld [vmem:[%s2466_s3 + $0x38] sm:$0xff]  }
  0xfe   :  { %v372_v52 = vmax.f32 %v318_v49, 0.0  ;;  %v1928_v49 = vld [vmem:[%s2466_s3 + $0x30] sm:$0xff]  }
  0xff   :  { %v370_v57 = vmax.f32 %v310_v53, 0.0  ;;  %v433_v53 = vpop.permute.xlu1 %432 }
 0x100   :  { %v386_v56 = vpack.c.bf16 %v372_v52, %v371_v51  ;;  %v1930_v51 = vld [vmem:[%s2468_s5] sm:$0xff]   ;;  %v428_v52 = vpop.permute.xlu0 %427 }
 0x101   :  { %v1742_v59 = vpop.f32.mrb[4].mxu0  ;;  %v385_v62 = vpack.c.bf16 %v370_v57, %v369_v55  ;;  %1800 = vmatprep.mubr.bf16.mxu0 %v1930_v51 }
 0x102   :  { %v331_v60 = vadd.f32 %v1742_v59, %v129_v42  ;;  %v322_v61 = vpop.f32.mrb[5].mxu0 }
 0x103   :  { %v1743_v63 = vpop.f32.mrb[6].mxu0  ;;  %v323_v0 = vadd.f32 %v322_v61, %v119_v40  ;;  %1752 = vmatprep.subr.bf16.mxu1 %v385_v62  ;;  %v443_v55 = vpop.permute.xlu1 %442 }
 0x104   :  { %v334_v1 = vadd.f32 %v1743_v63, %v134_v46  ;;  %v325_v3 = vpop.f32.mrb[7].mxu0  ;;  %1753 = vmatpush3.bf16.msra.mxu1 %v385_v62  ;;  %v375_v4 = vmax.f32 %v331_v60, 0.0  ;;  %v1925_v46 = vld [vmem:[%s2466_s3 + $0x18] sm:$0xff]  }
 0x105   :  { %v326_v6 = vadd.f32 %v325_v3, %v124_v41  ;;  %1754 = vmatprep.subr.bf16.mxu1 %v386_v56  ;;  %v373_v8 = vmax.f32 %v323_v0, 0.0 }
 0x106   :  { %v376_v5 = vmax.f32 %v334_v1, 0.0 }
 0x107   :  { %v374_v10 = vmax.f32 %v326_v6, 0.0  ;;  %v453_v57 = vpop.permute.xlu1 %452 }
 0x108   :  { %v388_v9 = vpack.c.bf16 %v376_v5, %v375_v4  ;;  %1755 = vmatpush3.bf16.msra.mxu1 %v386_v56 }
 0x109   :  { %v1746_v11 = vpop.f32.mrb[8].mxu0  ;;  %v387_v12 = vpack.c.bf16 %v374_v10, %v373_v8 }
 0x10a   :  { %v347_v13 = vadd.f32 %v1746_v11, %v149_v2  ;;  %v338_v14 = vpop.f32.mrb[9].mxu0 }
 0x10b   :  { %v1747_v16 = vpop.f32.mrb[10].mxu0  ;;  %v339_v17 = vadd.f32 %v338_v14, %v139_v54  ;;  %1756 = vmatprep.subr.bf16.mxu1 %v387_v12  ;;  %v438_v54 = vpop.permute.xlu0 %437 }
 0x10c   :  { %v350_v18 = vadd.f32 %v1747_v16, %v154_v7  ;;  %v341_v20 = vpop.f32.mrb[11].mxu0  ;;  %1757 = vmatpush3.bf16.msra.mxu1 %v387_v12  ;;  %v379_v21 = vmax.f32 %v347_v13, 0.0  ;;  %v463_v62 = vpop.permute.xlu1 %462 }
 0x10d   :  { %v342_v23 = vadd.f32 %v341_v20, %v144_v58  ;;  %1758 = vmatprep.subr.bf16.mxu1 %v388_v9  ;;  %v377_v24 = vmax.f32 %v339_v17, 0.0 }
 0x10e   :  { %v380_v22 = vmax.f32 %v350_v18, 0.0 }
 0x10f   :  { %v378_v26 = vmax.f32 %v342_v23, 0.0  ;;  %v448_v56 = vpop.permute.xlu0 %447 }
 0x110   :  { %v390_v25 = vpack.c.bf16 %v380_v22, %v379_v21  ;;  %1759 = vmatpush3.bf16.msra.mxu1 %v388_v9  ;;  %v473_v10 = vpop.permute.xlu1 %472 }
 0x111   :  { %v1750_v28 = vpop.f32.mrb[12].mxu0  ;;  %v389_v29 = vpack.c.bf16 %v378_v26, %v377_v24 }
 0x112   :  { %v363_v30 = vadd.f32 %v1750_v28, %v169_v27  ;;  %v354_v31 = vpop.f32.mrb[13].mxu0 }
 0x113   :  { %v1751_v33 = vpop.f32.mrb[14].mxu0  ;;  %v355_v34 = vadd.f32 %v354_v31, %v159_v15  ;;  %1760 = vmatprep.subr.bf16.mxu1 %v389_v29  ;;  %v458_v58 = vpop.permute.xlu0 %457 }
 0x114   :  { %v366_v35 = vadd.f32 %v1751_v33, %v174_v32  ;;  %v357_v36 = vpop.f32.mrb[15].mxu0  ;;  %1761 = vmatpush3.bf16.msra.mxu1 %v389_v29  ;;  %v383_v37 = vmax.f32 %v363_v30, 0.0  ;;  %v483_v23 = vpop.permute.xlu1 %482 }
 0x115   :  { %v358_v39 = vadd.f32 %v357_v36, %v164_v19  ;;  %1762 = vmatprep.subr.bf16.mxu1 %v390_v25  ;;  %v381_v40 = vmax.f32 %v355_v34, 0.0 }
 0x116   :  { %v384_v38 = vmax.f32 %v366_v35, 0.0 }
 0x117   :  { %v382_v42 = vmax.f32 %v358_v39, 0.0  ;;  %v468_v6 = vpop.permute.xlu0 %467 }
 0x118   :  { %v392_v41 = vpack.c.bf16 %v384_v38, %v383_v37  ;;  %1763 = vmatpush3.bf16.msra.mxu1 %v390_v25  ;;  %v493_v36 = vpop.permute.xlu1 %492 }
 0x119   :  { %v391_v43 = vpack.c.bf16 %v382_v42, %v381_v40 }
 0x11b   :  { %1764 = vmatprep.subr.bf16.mxu1 %v391_v43  ;;  %v478_v19 = vpop.permute.xlu0 %477 }
 0x11c   :  { %1765 = vmatpush3.bf16.msra.mxu1 %v391_v43 }
 0x11d   :  { %1766 = vmatprep.subr.bf16.mxu1 %v392_v41 }
 0x11f   :  { %v488_v31 = vpop.permute.xlu0 %487 }
 0x120   :  { %1767 = vmatpush3.bf16.msra.mxu1 %v392_v41 }
 0x123   :  { %1769 = vmatmul.mubr.bf16.vlgmr.msra.gmra.mrb[0].mxu1 %v1923_v44  ;;  %v498_v43 = vpop.permute.xlu0 %497 }
 0x124   :  { %1772 = vmatprep.mubr.bf16.mxu1 %v1924_v45 }
 0x12b   :  { %1773 = vmatmul.mubr.bf16.gmra.mrb[4].mxu1 %v1925_v46 }
 0x12c   :  { %1776 = vmatprep.mubr.bf16.mxu1 %v1926_v47 }
 0x133   :  { %1777 = vmatmul.mubr.bf16.gmra.mrb[8].mxu1 %v1927_v48  ;;  %v503_v48 = vpop.permute.xlu1 %502 }
 0x134   :  { %1780 = vmatprep.mubr.bf16.mxu1 %v1928_v49 }
 0x13b   :  { %1781 = vmatmul.mubr.bf16.gmra.mrb[12].mxu1 %v1929_v50 }
 0x1f6   :  { %v1770_v59 = vpop.f32.mrb[0].mxu1 }
 0x1f7   :  { %v596_v60 = vadd.f32 %v1770_v59, %v438_v54  ;;  %v587_v61 = vpop.f32.mrb[1].mxu1 }
 0x1f8   :  { %v588_v63 = vadd.f32 %v587_v61, %v428_v52  ;;  %v1771_v0 = vpop.f32.mrb[2].mxu1  ;;  %v1932_v61 = vld [vmem:[%s2468_s5 + $0x10] sm:$0xff]  }
 0x1f9   :  { %v599_v1 = vadd.f32 %v1771_v0, %v443_v55  ;;  %v590_v2 = vpop.f32.mrb[3].mxu1  ;;  %v652_v4 = vmax.f32 %v596_v60, 0.0  ;;  %v1931_v60 = vld [vmem:[%s2468_s5 + $0x8] sm:$0xff]  }
 0x1fa   :  { %v591_v3 = vadd.f32 %v590_v2, %v433_v53  ;;  %v650_v7 = vmax.f32 %v588_v63, 0.0  ;;  %v1934_v63 = vld [vmem:[%s2468_s5 + $0x20] sm:$0xff]   ;;  %v1935_v0 = vld [vmem:[%s2468_s5 + $0x28] sm:$0xff]   ;;  %v1937_v2 = vld [vmem:[%s2468_s5 + $0x38] sm:$0xff]  }
 0x1fb   :  { %v653_v5 = vmax.f32 %v599_v1, 0.0  ;;  %v1936_v1 = vld [vmem:[%s2468_s5 + $0x30] sm:$0xff]  }
 0x1fc   :  { %v651_v8 = vmax.f32 %v591_v3, 0.0  ;;  %v1938_v3 = vld [vmem:[%s2470_s7] sm:$0xff]  }
 0x1fd   :  { %v667_v9 = vpack.c.bf16 %v653_v5, %v652_v4  ;;  %1832 = vmatprep.mubr.bf16.mxu1 %v1938_v3  ;;  %v709_v4 = vpop.permute.xlu0 %708  ;;  %v714_v5 = vpop.permute.xlu1 %713 }
 0x1fe   :  { %v666_v11 = vpack.c.bf16 %v651_v8, %v650_v7  ;;  %v1774_v12 = vpop.f32.mrb[4].mxu1 }
 0x1ff   :  { %v612_v13 = vadd.f32 %v1774_v12, %v458_v58  ;;  %v603_v14 = vpop.f32.mrb[5].mxu1 }
 0x200   :  { %v604_v15 = vadd.f32 %v603_v14, %v448_v56  ;;  %v1775_v16 = vpop.f32.mrb[6].mxu1  ;;  %1784 = vmatprep.subr.bf16.mxu0 %v666_v11 }
 0x201   :  { %v615_v17 = vadd.f32 %v1775_v16, %v463_v62  ;;  %v606_v18 = vpop.f32.mrb[7].mxu1  ;;  %1785 = vmatpush3.bf16.msra.mxu0 %v666_v11  ;;  %v656_v21 = vmax.f32 %v612_v13, 0.0  ;;  %v1933_v62 = vld [vmem:[%s2468_s5 + $0x18] sm:$0xff]   ;;  %v724_v7 = vpop.permute.xlu1 %723 }
 0x202   :  { %v607_v20 = vadd.f32 %v606_v18, %v453_v57  ;;  %1786 = vmatprep.subr.bf16.mxu0 %v667_v9  ;;  %v654_v24 = vmax.f32 %v604_v15, 0.0 }
 0x203   :  { %v657_v22 = vmax.f32 %v615_v17, 0.0 }
 0x204   :  { %v655_v25 = vmax.f32 %v607_v20, 0.0 }
 0x205   :  { %v669_v26 = vpack.c.bf16 %v657_v22, %v656_v21  ;;  %1787 = vmatpush3.bf16.msra.mxu0 %v667_v9  ;;  %v734_v9 = vpop.permute.xlu1 %733 }
 0x206   :  { %v668_v27 = vpack.c.bf16 %v655_v25, %v654_v24  ;;  %v1778_v28 = vpop.f32.mrb[8].mxu1 }
 0x207   :  { %v628_v29 = vadd.f32 %v1778_v28, %v478_v19  ;;  %v619_v30 = vpop.f32.mrb[9].mxu1 }
 0x208   :  { %v620_v32 = vadd.f32 %v619_v30, %v468_v6  ;;  %v1779_v33 = vpop.f32.mrb[10].mxu1  ;;  %1788 = vmatprep.subr.bf16.mxu0 %v668_v27  ;;  %v719_v6 = vpop.permute.xlu0 %718 }
 0x209   :  { %v631_v34 = vadd.f32 %v1779_v33, %v483_v23  ;;  %v622_v35 = vpop.f32.mrb[11].mxu1  ;;  %1789 = vmatpush3.bf16.msra.mxu0 %v668_v27  ;;  %v660_v38 = vmax.f32 %v628_v29, 0.0  ;;  %v744_v14 = vpop.permute.xlu1 %743 }
 0x20a   :  { %v623_v37 = vadd.f32 %v622_v35, %v473_v10  ;;  %1790 = vmatprep.subr.bf16.mxu0 %v669_v26  ;;  %v658_v40 = vmax.f32 %v620_v32, 0.0 }
 0x20b   :  { %v661_v39 = vmax.f32 %v631_v34, 0.0 }
 0x20c   :  { %v659_v41 = vmax.f32 %v623_v37, 0.0  ;;  %v729_v8 = vpop.permute.xlu0 %728 }
 0x20d   :  { %v671_v42 = vpack.c.bf16 %v661_v39, %v660_v38  ;;  %1791 = vmatpush3.bf16.msra.mxu0 %v669_v26  ;;  %v754_v26 = vpop.permute.xlu1 %753 }
 0x20e   :  { %v670_v44 = vpack.c.bf16 %v659_v41, %v658_v40  ;;  %v1782_v45 = vpop.f32.mrb[12].mxu1 }
 0x20f   :  { %v644_v46 = vadd.f32 %v1782_v45, %v498_v43  ;;  %v635_v47 = vpop.f32.mrb[13].mxu1 }
 0x210   :  { %v636_v49 = vadd.f32 %v635_v47, %v488_v31  ;;  %v1783_v50 = vpop.f32.mrb[14].mxu1  ;;  %1792 = vmatprep.subr.bf16.mxu0 %v670_v44  ;;  %v739_v10 = vpop.permute.xlu0 %738 }
 0x211   :  { %v647_v51 = vadd.f32 %v1783_v50, %v503_v48  ;;  %v638_v52 = vpop.f32.mrb[15].mxu1  ;;  %1793 = vmatpush3.bf16.msra.mxu0 %v670_v44  ;;  %v664_v54 = vmax.f32 %v644_v46, 0.0  ;;  %v764_v39 = vpop.permute.xlu1 %763 }
 0x212   :  { %v639_v53 = vadd.f32 %v638_v52, %v493_v36  ;;  %1794 = vmatprep.subr.bf16.mxu0 %v671_v42  ;;  %v662_v56 = vmax.f32 %v636_v49, 0.0 }
 0x213   :  { %v665_v55 = vmax.f32 %v647_v51, 0.0 }
 0x214   :  { %v663_v57 = vmax.f32 %v639_v53, 0.0  ;;  %v749_v22 = vpop.permute.xlu0 %748 }
 0x215   :  { %v673_v58 = vpack.c.bf16 %v665_v55, %v664_v54  ;;  %1795 = vmatpush3.bf16.msra.mxu0 %v671_v42  ;;  %v774_v52 = vpop.permute.xlu1 %773 }
 0x216   :  { %v672_v59 = vpack.c.bf16 %v663_v57, %v662_v56 }
 0x218   :  { %1796 = vmatprep.subr.bf16.mxu0 %v672_v59  ;;  %v759_v35 = vpop.permute.xlu0 %758 }
 0x219   :  { %1797 = vmatpush3.bf16.msra.mxu0 %v672_v59 }
 0x21a   :  { %1798 = vmatprep.subr.bf16.mxu0 %v673_v58 }
 0x21c   :  { %v769_v47 = vpop.permute.xlu0 %768 }
 0x21d   :  { %1799 = vmatpush3.bf16.msra.mxu0 %v673_v58 }
 0x220   :  { %1801 = vmatmul.mubr.bf16.vlgmr.msra.gmra.mrb[16].mxu0 %v1931_v60  ;;  %v779_v59 = vpop.permute.xlu0 %778 }
 0x221   :  { %1804 = vmatprep.mubr.bf16.mxu0 %v1932_v61 }
 0x228   :  { %1805 = vmatmul.mubr.bf16.gmra.mrb[20].mxu0 %v1933_v62 }
 0x229   :  { %1808 = vmatprep.mubr.bf16.mxu0 %v1934_v63 }
 0x230   :  { %1809 = vmatmul.mubr.bf16.gmra.mrb[24].mxu0 %v1935_v0  ;;  %v784_v0 = vpop.permute.xlu1 %783 }
 0x231   :  { %1812 = vmatprep.mubr.bf16.mxu0 %v1936_v1 }
 0x238   :  { %1813 = vmatmul.mubr.bf16.gmra.mrb[28].mxu0 %v1937_v2 }
 0x2f3   :  { %v1802_v11 = vpop.f32.mrb[16].mxu0 }
 0x2f4   :  { %v877_v12 = vadd.f32 %v1802_v11, %v719_v6  ;;  %v868_v13 = vpop.f32.mrb[17].mxu0 }
 0x2f5   :  { %v869_v15 = vadd.f32 %v868_v13, %v709_v4  ;;  %v1803_v16 = vpop.f32.mrb[18].mxu0  ;;  %v1940_v13 = vld [vmem:[%s2470_s7 + $0x10] sm:$0xff]  }
 0x2f6   :  { %v880_v17 = vadd.f32 %v1803_v16, %v724_v7  ;;  %v871_v18 = vpop.f32.mrb[19].mxu0  ;;  %v933_v20 = vmax.f32 %v877_v12, 0.0  ;;  %v1939_v12 = vld [vmem:[%s2470_s7 + $0x8] sm:$0xff]  }
 0x2f7   :  { %v872_v19 = vadd.f32 %v871_v18, %v714_v5  ;;  %v931_v23 = vmax.f32 %v869_v15, 0.0  ;;  %v1942_v15 = vld [vmem:[%s2470_s7 + $0x20] sm:$0xff]   ;;  %v1943_v16 = vld [vmem:[%s2470_s7 + $0x28] sm:$0xff]   ;;  %v1945_v18 = vld [vmem:[%s2470_s7 + $0x38] sm:$0xff]  }
 0x2f8   :  { %v934_v21 = vmax.f32 %v880_v17, 0.0  ;;  %v1944_v17 = vld [vmem:[%s2470_s7 + $0x30] sm:$0xff]  }
 0x2f9   :  { %v932_v24 = vmax.f32 %v872_v19, 0.0  ;;  %v1946_v19 = vld [vmem:[%s2472_s9] sm:$0xff]  }
 0x2fa   :  { %v948_v25 = vpack.c.bf16 %v934_v21, %v933_v20  ;;  %1864 = vmatprep.mubr.bf16.mxu0 %v1946_v19  ;;  %v990_v20 = vpop.permute.xlu0 %989  ;;  %v995_v21 = vpop.permute.xlu1 %994 }
 0x2fb   :  { %v947_v27 = vpack.c.bf16 %v932_v24, %v931_v23  ;;  %v1806_v28 = vpop.f32.mrb[20].mxu0 }
 0x2fc   :  { %v893_v29 = vadd.f32 %v1806_v28, %v739_v10  ;;  %v884_v30 = vpop.f32.mrb[21].mxu0 }
 0x2fd   :  { %v885_v31 = vadd.f32 %v884_v30, %v729_v8  ;;  %v1807_v32 = vpop.f32.mrb[22].mxu0  ;;  %1816 = vmatprep.subr.bf16.mxu1 %v947_v27 }
 0x2fe   :  { %v896_v33 = vadd.f32 %v1807_v32, %v744_v14  ;;  %v887_v34 = vpop.f32.mrb[23].mxu0  ;;  %1817 = vmatpush3.bf16.msra.mxu1 %v947_v27  ;;  %v937_v37 = vmax.f32 %v893_v29, 0.0  ;;  %v1941_v14 = vld [vmem:[%s2470_s7 + $0x18] sm:$0xff]   ;;  %v1005_v23 = vpop.permute.xlu1 %1004 }
 0x2ff   :  { %v888_v36 = vadd.f32 %v887_v34, %v734_v9  ;;  %1818 = vmatprep.subr.bf16.mxu1 %v948_v25  ;;  %v935_v40 = vmax.f32 %v885_v31, 0.0 }
 0x300   :  { %v938_v38 = vmax.f32 %v896_v33, 0.0 }
 0x301   :  { %v936_v41 = vmax.f32 %v888_v36, 0.0 }
 0x302   :  { %v950_v42 = vpack.c.bf16 %v938_v38, %v937_v37  ;;  %1819 = vmatpush3.bf16.msra.mxu1 %v948_v25  ;;  %v1015_v25 = vpop.permute.xlu1 %1014 }
 0x303   :  { %v949_v43 = vpack.c.bf16 %v936_v41, %v935_v40  ;;  %v1810_v44 = vpop.f32.mrb[24].mxu0 }
 0x304   :  { %v909_v45 = vadd.f32 %v1810_v44, %v759_v35  ;;  %v900_v46 = vpop.f32.mrb[25].mxu0 }
 0x305   :  { %v901_v48 = vadd.f32 %v900_v46, %v749_v22  ;;  %v1811_v49 = vpop.f32.mrb[26].mxu0  ;;  %1820 = vmatprep.subr.bf16.mxu1 %v949_v43  ;;  %v1000_v22 = vpop.permute.xlu0 %999 }
 0x306   :  { %v912_v50 = vadd.f32 %v1811_v49, %v764_v39  ;;  %v903_v51 = vpop.f32.mrb[27].mxu0  ;;  %1821 = vmatpush3.bf16.msra.mxu1 %v949_v43  ;;  %v941_v54 = vmax.f32 %v909_v45, 0.0  ;;  %v1025_v30 = vpop.permute.xlu1 %1024 }
 0x307   :  { %v904_v53 = vadd.f32 %v903_v51, %v754_v26  ;;  %1822 = vmatprep.subr.bf16.mxu1 %v950_v42  ;;  %v939_v56 = vmax.f32 %v901_v48, 0.0 }
 0x308   :  { %v942_v55 = vmax.f32 %v912_v50, 0.0 }
 0x309   :  { %v940_v57 = vmax.f32 %v904_v53, 0.0  ;;  %v1010_v24 = vpop.permute.xlu0 %1009 }
 0x30a   :  { %v952_v58 = vpack.c.bf16 %v942_v55, %v941_v54  ;;  %1823 = vmatpush3.bf16.msra.mxu1 %v950_v42  ;;  %v1035_v42 = vpop.permute.xlu1 %1034 }
 0x30b   :  { %v951_v60 = vpack.c.bf16 %v940_v57, %v939_v56  ;;  %v1814_v61 = vpop.f32.mrb[28].mxu0 }
 0x30c   :  { %v925_v62 = vadd.f32 %v1814_v61, %v779_v59  ;;  %v916_v63 = vpop.f32.mrb[29].mxu0 }
 0x30d   :  { %v917_v1 = vadd.f32 %v916_v63, %v769_v47  ;;  %v1815_v2 = vpop.f32.mrb[30].mxu0  ;;  %1824 = vmatprep.subr.bf16.mxu1 %v951_v60  ;;  %v1020_v26 = vpop.permute.xlu0 %1019 }
 0x30e   :  { %v928_v3 = vadd.f32 %v1815_v2, %v784_v0  ;;  %v919_v4 = vpop.f32.mrb[31].mxu0  ;;  %1825 = vmatpush3.bf16.msra.mxu1 %v951_v60  ;;  %v945_v6 = vmax.f32 %v925_v62, 0.0  ;;  %v1045_v55 = vpop.permute.xlu1 %1044 }
 0x30f   :  { %v920_v5 = vadd.f32 %v919_v4, %v774_v52  ;;  %1826 = vmatprep.subr.bf16.mxu1 %v952_v58  ;;  %v943_v8 = vmax.f32 %v917_v1, 0.0 }
 0x310   :  { %v946_v7 = vmax.f32 %v928_v3, 0.0 }
 0x311   :  { %v944_v9 = vmax.f32 %v920_v5, 0.0  ;;  %v1030_v38 = vpop.permute.xlu0 %1029 }
 0x312   :  { %v954_v10 = vpack.c.bf16 %v946_v7, %v945_v6  ;;  %1827 = vmatpush3.bf16.msra.mxu1 %v952_v58  ;;  %v1055_v4 = vpop.permute.xlu1 %1054 }
 0x313   :  { %v953_v11 = vpack.c.bf16 %v944_v9, %v943_v8 }
 0x315   :  { %1828 = vmatprep.subr.bf16.mxu1 %v953_v11  ;;  %v1040_v51 = vpop.permute.xlu0 %1039 }
 0x316   :  { %1829 = vmatpush3.bf16.msra.mxu1 %v953_v11 }
 0x317   :  { %1830 = vmatprep.subr.bf16.mxu1 %v954_v10 }
 0x319   :  { %v1050_v63 = vpop.permute.xlu0 %1049 }
 0x31a   :  { %1831 = vmatpush3.bf16.msra.mxu1 %v954_v10 }
 0x31d   :  { %1833 = vmatmul.mubr.bf16.vlgmr.msra.gmra.mrb[16].mxu1 %v1939_v12  ;;  %v1060_v11 = vpop.permute.xlu0 %1059 }
 0x31e   :  { %1836 = vmatprep.mubr.bf16.mxu1 %v1940_v13 }
 0x325   :  { %1837 = vmatmul.mubr.bf16.gmra.mrb[20].mxu1 %v1941_v14 }
 0x326   :  { %1840 = vmatprep.mubr.bf16.mxu1 %v1942_v15 }
 0x32d   :  { %1841 = vmatmul.mubr.bf16.gmra.mrb[24].mxu1 %v1943_v16  ;;  %v1065_v16 = vpop.permute.xlu1 %1064 }
 0x32e   :  { %1844 = vmatprep.mubr.bf16.mxu1 %v1944_v17 }
 0x335   :  { %1845 = vmatmul.mubr.bf16.gmra.mrb[28].mxu1 %v1945_v18 }
 0x3f0   :  { %v1834_v27 = vpop.f32.mrb[16].mxu1 }
 0x3f1   :  { %v1158_v28 = vadd.f32 %v1834_v27, %v1000_v22  ;;  %v1149_v29 = vpop.f32.mrb[17].mxu1 }
 0x3f2   :  { %v1150_v31 = vadd.f32 %v1149_v29, %v990_v20  ;;  %v1835_v32 = vpop.f32.mrb[18].mxu1  ;;  %v1948_v29 = vld [vmem:[%s2472_s9 + $0x10] sm:$0xff]  }
 0x3f3   :  { %v1161_v33 = vadd.f32 %v1835_v32, %v1005_v23  ;;  %v1152_v34 = vpop.f32.mrb[19].mxu1  ;;  %v1214_v36 = vmax.f32 %v1158_v28, 0.0  ;;  %v1947_v28 = vld [vmem:[%s2472_s9 + $0x8] sm:$0xff]  }
 0x3f4   :  { %v1153_v35 = vadd.f32 %v1152_v34, %v995_v21  ;;  %v1212_v39 = vmax.f32 %v1150_v31, 0.0  ;;  %v1950_v31 = vld [vmem:[%s2472_s9 + $0x20] sm:$0xff]   ;;  %v1951_v32 = vld [vmem:[%s2472_s9 + $0x28] sm:$0xff]   ;;  %v1953_v34 = vld [vmem:[%s2472_s9 + $0x38] sm:$0xff]  }
 0x3f5   :  { %v1215_v37 = vmax.f32 %v1161_v33, 0.0  ;;  %v1952_v33 = vld [vmem:[%s2472_s9 + $0x30] sm:$0xff]  }
 0x3f6   :  { %v1213_v40 = vmax.f32 %v1153_v35, 0.0  ;;  %v1979_v35 = vmov 0.0  }
 0x3f7   :  { %v1229_v41 = vpack.c.bf16 %v1215_v37, %v1214_v36  ;;  %1880 = vmatprep.subr.bf16.mxu1 %v1979_v35  ;;  %1896 = vmatprep.mubr.msk.bf16.mxu1 %vm1980_vm0, %v1979_v35  ;;  %v1271_v36 = vpop.permute.xlu0 %1270  ;;  %v1276_v37 = vpop.permute.xlu1 %1275 }
 0x3f8   :  { %v1228_v43 = vpack.c.bf16 %v1213_v40, %v1212_v39  ;;  %v1838_v44 = vpop.f32.mrb[20].mxu1 }
 0x3f9   :  { %v1174_v45 = vadd.f32 %v1838_v44, %v1020_v26  ;;  %v1165_v46 = vpop.f32.mrb[21].mxu1 }
 0x3fa   :  { %v1166_v47 = vadd.f32 %v1165_v46, %v1010_v24  ;;  %v1839_v48 = vpop.f32.mrb[22].mxu1  ;;  %1848 = vmatprep.subr.bf16.mxu0 %v1228_v43 }
 0x3fb   :  { %v1177_v49 = vadd.f32 %v1839_v48, %v1025_v30  ;;  %v1168_v50 = vpop.f32.mrb[23].mxu1  ;;  %1849 = vmatpush3.bf16.msra.mxu0 %v1228_v43  ;;  %v1218_v53 = vmax.f32 %v1174_v45, 0.0  ;;  %v1949_v30 = vld [vmem:[%s2472_s9 + $0x18] sm:$0xff]   ;;  %v1286_v39 = vpop.permute.xlu1 %1285 }
 0x3fc   :  { %v1169_v52 = vadd.f32 %v1168_v50, %v1015_v25  ;;  %1850 = vmatprep.subr.bf16.mxu0 %v1229_v41  ;;  %v1216_v56 = vmax.f32 %v1166_v47, 0.0 }
 0x3fd   :  { %v1219_v54 = vmax.f32 %v1177_v49, 0.0 }
 0x3fe   :  { %v1217_v57 = vmax.f32 %v1169_v52, 0.0 }
 0x3ff   :  { %v1231_v58 = vpack.c.bf16 %v1219_v54, %v1218_v53  ;;  %1851 = vmatpush3.bf16.msra.mxu0 %v1229_v41  ;;  %v1296_v41 = vpop.permute.xlu1 %1295 }
 0x400   :  { %v1230_v59 = vpack.c.bf16 %v1217_v57, %v1216_v56  ;;  %v1842_v60 = vpop.f32.mrb[24].mxu1 }
 0x401   :  { %v1190_v61 = vadd.f32 %v1842_v60, %v1040_v51  ;;  %v1181_v62 = vpop.f32.mrb[25].mxu1 }
 0x402   :  { %v1182_v0 = vadd.f32 %v1181_v62, %v1030_v38  ;;  %v1843_v1 = vpop.f32.mrb[26].mxu1  ;;  %1852 = vmatprep.subr.bf16.mxu0 %v1230_v59  ;;  %v1281_v38 = vpop.permute.xlu0 %1280 }
 0x403   :  { %v1193_v2 = vadd.f32 %v1843_v1, %v1045_v55  ;;  %v1184_v3 = vpop.f32.mrb[27].mxu1  ;;  %1853 = vmatpush3.bf16.msra.mxu0 %v1230_v59  ;;  %v1222_v6 = vmax.f32 %v1190_v61, 0.0  ;;  %v1306_v46 = vpop.permute.xlu1 %1305 }
 0x404   :  { %v1185_v5 = vadd.f32 %v1184_v3, %v1035_v42  ;;  %1854 = vmatprep.subr.bf16.mxu0 %v1231_v58  ;;  %v1220_v8 = vmax.f32 %v1182_v0, 0.0 }
 0x405   :  { %v1223_v7 = vmax.f32 %v1193_v2, 0.0 }
 0x406   :  { %v1221_v9 = vmax.f32 %v1185_v5, 0.0  ;;  %v1291_v40 = vpop.permute.xlu0 %1290 }
 0x407   :  { %v1233_v10 = vpack.c.bf16 %v1223_v7, %v1222_v6  ;;  %1855 = vmatpush3.bf16.msra.mxu0 %v1231_v58  ;;  %v1316_v58 = vpop.permute.xlu1 %1315 }
 0x408   :  { %v1232_v12 = vpack.c.bf16 %v1221_v9, %v1220_v8  ;;  %v1846_v13 = vpop.f32.mrb[28].mxu1 }
 0x409   :  { %v1206_v14 = vadd.f32 %v1846_v13, %v1060_v11  ;;  %v1197_v15 = vpop.f32.mrb[29].mxu1 }
 0x40a   :  { %v1198_v17 = vadd.f32 %v1197_v15, %v1050_v63  ;;  %v1847_v18 = vpop.f32.mrb[30].mxu1  ;;  %1856 = vmatprep.subr.bf16.mxu0 %v1232_v12  ;;  %v1301_v42 = vpop.permute.xlu0 %1300 }
 0x40b   :  { %v1209_v19 = vadd.f32 %v1847_v18, %v1065_v16  ;;  %v1200_v20 = vpop.f32.mrb[31].mxu1  ;;  %1857 = vmatpush3.bf16.msra.mxu0 %v1232_v12  ;;  %v1226_v22 = vmax.f32 %v1206_v14, 0.0  ;;  %v1326_v7 = vpop.permute.xlu1 %1325 }
 0x40c   :  { %v1201_v21 = vadd.f32 %v1200_v20, %v1055_v4  ;;  %1858 = vmatprep.subr.bf16.mxu0 %v1233_v10  ;;  %v1224_v24 = vmax.f32 %v1198_v17, 0.0 }
 0x40d   :  { %v1227_v23 = vmax.f32 %v1209_v19, 0.0 }
 0x40e   :  { %v1225_v25 = vmax.f32 %v1201_v21, 0.0  ;;  %v1311_v54 = vpop.permute.xlu0 %1310 }
 0x40f   :  { %v1235_v26 = vpack.c.bf16 %v1227_v23, %v1226_v22  ;;  %1859 = vmatpush3.bf16.msra.mxu0 %v1233_v10  ;;  %v1336_v20 = vpop.permute.xlu1 %1335 }
 0x410   :  { %v1234_v27 = vpack.c.bf16 %v1225_v25, %v1224_v24 }
 0x412   :  { %1860 = vmatprep.subr.bf16.mxu0 %v1234_v27  ;;  %v1321_v3 = vpop.permute.xlu0 %1320 }
 0x413   :  { %1861 = vmatpush3.bf16.msra.mxu0 %v1234_v27 }
 0x414   :  { %1862 = vmatprep.subr.bf16.mxu0 %v1235_v26 }
 0x416   :  { %v1331_v15 = vpop.permute.xlu0 %1330 }
 0x417   :  { %1863 = vmatpush3.bf16.msra.mxu0 %v1235_v26 }
 0x41a   :  { %1865 = vmatmul.mubr.bf16.vlgmr.msra.gmra.mrb[32].mxu0 %v1947_v28  ;;  %v1341_v27 = vpop.permute.xlu0 %1340 }
 0x41b   :  { %1868 = vmatprep.mubr.bf16.mxu0 %v1948_v29 }
 0x422   :  { %1869 = vmatmul.mubr.bf16.gmra.mrb[36].mxu0 %v1949_v30 }
 0x423   :  { %1872 = vmatprep.mubr.bf16.mxu0 %v1950_v31 }
 0x42a   :  { %1873 = vmatmul.mubr.bf16.gmra.mrb[40].mxu0 %v1951_v32  ;;  %v1346_v32 = vpop.permute.xlu1 %1345 }
 0x42b   :  { %1876 = vmatprep.mubr.bf16.mxu0 %v1952_v33 }
 0x432   :  { %1877 = vmatmul.mubr.bf16.gmra.mrb[44].mxu0 %v1953_v34 }
 0x4ed   :  { %v1866_v43 = vpop.f32.mrb[32].mxu0 }
 0x4ee   :  { %v1439_v44 = vadd.f32 %v1866_v43, %v1281_v38  ;;  %v1430_v45 = vpop.f32.mrb[33].mxu0 }
 0x4ef   :  { %v1431_v47 = vadd.f32 %v1430_v45, %v1271_v36  ;;  %v1867_v48 = vpop.f32.mrb[34].mxu0  ;;  %v1517_v45 = vld [vmem:[%s2474_s11] sm:$0x1] }
 0x4f0   :  { %v1442_v49 = vadd.f32 %v1867_v48, %v1286_v39  ;;  %v1433_v50 = vpop.f32.mrb[35].mxu0  ;;  %v1495_v52 = vmax.f32 %v1439_v44, 0.0 }
 0x4f1   :  { %v1434_v51 = vadd.f32 %v1433_v50, %v1276_v37  ;;  %v1493_v55 = vmax.f32 %v1431_v47, 0.0 }
 0x4f2   :  { %v1496_v53 = vmax.f32 %v1442_v49, 0.0  ;;  %v1522_v49 = vpop.permute.xlu0 %1521 }
 0x4f3   :  { %v1494_v56 = vmax.f32 %v1434_v51, 0.0 }
 0x4f4   :  { %v1510_v57 = vpack.c.bf16 %v1496_v53, %v1495_v52 }
 0x4f5   :  { %v1509_v59 = vpack.c.bf16 %v1494_v56, %v1493_v55  ;;  %v1870_v60 = vpop.f32.mrb[36].mxu0 }
 0x4f6   :  { %v1455_v61 = vadd.f32 %v1870_v60, %v1301_v42  ;;  %v1446_v62 = vpop.f32.mrb[37].mxu0 }
 0x4f7   :  { %v1447_v63 = vadd.f32 %v1446_v62, %v1291_v40  ;;  %v1871_v0 = vpop.f32.mrb[38].mxu0  ;;  %1881 = vmatpush3.bf16.msra.mxu1 %v1509_v59 }
 0x4f8   :  { %v1458_v1 = vadd.f32 %v1871_v0, %v1306_v46  ;;  %v1449_v2 = vpop.f32.mrb[39].mxu0  ;;  %1882 = vmatprep.subr.bf16.mxu1 %v1979_v35  ;;  %v1499_v5 = vmax.f32 %v1455_v61, 0.0  ;;  %v1524_v46 = vlaneseq }
 0x4f9   :  { %v1450_v4 = vadd.f32 %v1449_v2, %v1296_v41  ;;  %v1497_v8 = vmax.f32 %v1447_v63, 0.0 }
 0x4fa   :  { %v1500_v6 = vmax.f32 %v1458_v1, 0.0  ;;  %v1525_v47 = vshrl.u32 %v1524_v46, 7 }
 0x4fb   :  { %v1498_v9 = vmax.f32 %v1450_v4, 0.0  ;;  %1883 = vmatpush3.bf16.msra.mxu1 %v1510_v57 }
 0x4fc   :  { %v1512_v10 = vpack.c.bf16 %v1500_v6, %v1499_v5  ;;  %1884 = vmatprep.subr.bf16.mxu1 %v1979_v35  ;;  %v1526_v48 = vsub.s32 0, %v1525_v47 }
 0x4fd   :  { %v1511_v11 = vpack.c.bf16 %v1498_v9, %v1497_v8  ;;  %v1874_v12 = vpop.f32.mrb[40].mxu0 }
 0x4fe   :  { %v1471_v13 = vadd.f32 %v1874_v12, %v1321_v3  ;;  %v1462_v14 = vpop.f32.mrb[41].mxu0  ;;  %v1527_v50 = vrot.slane %v1522_v49, %v1526_v48 }
 0x4ff   :  { %v1463_v16 = vadd.f32 %v1462_v14, %v1311_v54  ;;  %v1875_v17 = vpop.f32.mrb[42].mxu0  ;;  %1885 = vmatpush3.bf16.msra.mxu1 %v1511_v11 }
 0x500   :  { %v1474_v18 = vadd.f32 %v1875_v17, %v1326_v7  ;;  %v1465_v19 = vpop.f32.mrb[43].mxu0  ;;  %1886 = vmatprep.subr.bf16.mxu1 %v1979_v35  ;;  %v1503_v22 = vmax.f32 %v1471_v13, 0.0 }
 0x501   :  { %v1466_v21 = vadd.f32 %v1465_v19, %v1316_v58  ;;  %v1501_v24 = vmax.f32 %v1463_v16, 0.0 }
 0x502   :  { %v1504_v23 = vmax.f32 %v1474_v18, 0.0 }
 0x503   :  { %v1502_v25 = vmax.f32 %v1466_v21, 0.0  ;;  %1887 = vmatpush3.bf16.msra.mxu1 %v1512_v10 }
 0x504   :  { %v1514_v26 = vpack.c.bf16 %v1504_v23, %v1503_v22  ;;  %1888 = vmatprep.subr.bf16.mxu1 %v1979_v35 }
 0x505   :  { %v1513_v28 = vpack.c.bf16 %v1502_v25, %v1501_v24  ;;  %v1878_v29 = vpop.f32.mrb[44].mxu0 }
 0x506   :  { %v1487_v30 = vadd.f32 %v1878_v29, %v1341_v27  ;;  %v1478_v31 = vpop.f32.mrb[45].mxu0 }
 0x507   :  { %v1479_v33 = vadd.f32 %v1478_v31, %v1331_v15  ;;  %v1879_v34 = vpop.f32.mrb[46].mxu0  ;;  %1889 = vmatpush3.bf16.msra.mxu1 %v1513_v28 }
 0x508   :  { %v1490_v36 = vadd.f32 %v1879_v34, %v1346_v32  ;;  %v1481_v37 = vpop.f32.mrb[47].mxu0  ;;  %1890 = vmatprep.subr.bf16.mxu1 %v1979_v35  ;;  %v1507_v39 = vmax.f32 %v1487_v30, 0.0 }
 0x509   :  { %v1482_v38 = vadd.f32 %v1481_v37, %v1336_v20  ;;  %v1505_v41 = vmax.f32 %v1479_v33, 0.0 }
 0x50a   :  { %v1508_v40 = vmax.f32 %v1490_v36, 0.0 }
 0x50b   :  { %v1506_v42 = vmax.f32 %v1482_v38, 0.0  ;;  %1891 = vmatpush3.bf16.msra.mxu1 %v1514_v26 }
 0x50c   :  { %v1516_v43 = vpack.c.bf16 %v1508_v40, %v1507_v39  ;;  %1892 = vmatprep.subr.bf16.mxu1 %v1979_v35 }
 0x50d   :  { %v1515_v44 = vpack.c.bf16 %v1506_v42, %v1505_v41 }
 0x50f   :  { %1893 = vmatpush3.bf16.msra.mxu1 %v1515_v44 }
 0x510   :  { %1894 = vmatprep.subr.bf16.mxu1 %v1979_v35 }
 0x513   :  { %1895 = vmatpush3.bf16.msra.mxu1 %v1516_v43 }
 0x516   :  { %1897 = vmatmul.mubr.bf16.vlgmr.msra.gmra.mrb[32].mxu1 %v1517_v45 }
 0x5e9   :  { %v1562_v51 = vpop.f32.mrb[32].mxu1 }
 0x5ea   :  { %v1563_v52 = vadd.f32 %v1562_v51, %v1527_v50  ;;  %v1898_v53 = vpop.f32.mrb[33].mxu1 }
 0x5eb   :  { %v1565_v54 = vpop.f32.mrb[34].mxu1 }
 0x5ec   :  { %1568 = vst [vmem:[#allocation3] sm:$0x1] %v1563_v52  ;;  %v1899_v35 = vpop.f32.mrb[35].mxu1 }
 0x5ed   :  { %1965 = shalt.err (!%p1962_p4)
}
 0x5ee   :  { %s1966_s24 = scalar_lea.hbm %s2476_s13, 16 }
 0x5ef   :  { %p1967_p5 = scmp.ne.s32.totalorder %s2476_s13, %s1966_s24  ;;  %p1970_p6 = scmp.lt.u32.totalorder %s1966_s24, %s2476_s13 }
 0x5f1   :  { %p1972_p7 = pnand %p1970_p6, %p1967_p5 }
 0x5f3   :  { %1975 = shalt.err (!%p1972_p7)
}
 0x5f4   :  { %1578 = dma.vmem_to_hbm [thread:$0]  %s1576_s20, 16, %s2476_s13, [#allocation4]  }
 0x5f5   :  { %1976 = dma.done.wait [#allocation4], 16  }
 0x5f6   :  { %1977 = vsyncadd [#allocation4], 4294967280 }
 0x5f7   :  { %1582 = vsyncpa [#allocation4], 1 }

</bundles_post_ra>
